<compile_context>
chip_gen: v6e
topology: v6e:2x2x1
jax: 0.10.0
libtpu: 0.0.40
codegen_flags: <defaults>
</compile_context>

<pallas_src>
import jax
import jax.numpy as jnp
from jax.experimental import pallas as pl
from jax.experimental.pallas import tpu as pltpu

_LANE = 128  # lane width; pad last output dim to a multiple of this


def _fused_tail_kernel(x_ref, w1_ref, b1_ref, w2_ref, b2_ref, w3_ref, b3_ref,
                       o_ref):
    """flatten-ed x -> Linear+ReLU -> Linear+ReLU -> Linear, all in VMEM."""
    x = x_ref[...]

    # Layer 1: (B, K) @ (K, H) + b -> ReLU
    h = jnp.dot(x, w1_ref[...], preferred_element_type=jnp.float32)
    h = jnp.maximum(h + b1_ref[...].astype(jnp.float32), 0.0)

    # Layer 2: (B, H) @ (H, H) + b -> ReLU
    h = jnp.dot(h.astype(w2_ref.dtype), w2_ref[...],
                preferred_element_type=jnp.float32)
    h = jnp.maximum(h + b2_ref[...].astype(jnp.float32), 0.0)

    # Layer 3 (no ReLU): (B, H) @ (H, Npad) + b  -- Npad is lane-dense (128)
    y = jnp.dot(h.astype(w3_ref.dtype), w3_ref[...],
                preferred_element_type=jnp.float32)
    y = y + b3_ref[...].astype(jnp.float32)

    o_ref[...] = y.astype(o_ref.dtype)


def vgg16_tail_fused(x, w1, b1, w2, b2, w3, b3):
    """y = (relu(relu(x@w1+b1)@w2+b2))@w3+b3, one pallas_call, one grid step.

    w3/b3 must already be padded to a lane-dense (multiple-of-128) last dim.
    """
    M, K = x.shape
    Kw1, N1 = w1.shape
    Kw2, N2 = w2.shape
    Kw3, N3 = w3.shape
    assert K == Kw1 and N1 == Kw2 and N2 == Kw3
    assert b1.shape == (1, N1) and b2.shape == (1, N2) and b3.shape == (1, N3)
    assert N3 % _LANE == 0, "final layer must be padded to a lane-dense width"

    full = lambda i: (0, 0)  # single grid step; every operand is one full block

    return pl.pallas_call(
        _fused_tail_kernel,
        out_shape=jax.ShapeDtypeStruct((M, N3), x.dtype),
        grid_spec=pltpu.PrefetchScalarGridSpec(
            num_scalar_prefetch=0,
            grid=(1,),
            in_specs=[
                pl.BlockSpec((M, K), full),     # x        (whole batch)
                pl.BlockSpec((K, N1), full),    # w1
                pl.BlockSpec((1, N1), full),    # b1
                pl.BlockSpec((N1, N2), full),   # w2
                pl.BlockSpec((1, N2), full),    # b2
                pl.BlockSpec((N2, N3), full),   # w3 (lane-padded)
                pl.BlockSpec((1, N3), full),    # b3 (lane-padded)
            ],
            out_specs=pl.BlockSpec((M, N3), full),
        ),
        compiler_params=pltpu.CompilerParams(
            dimension_semantics=("arbitrary",),
            vmem_limit_bytes=32 * 1024 * 1024,
        ),
    )(x, w1, b1, w2, b2, w3, b3)


class Vgg16TailPallas:
    """Scaled-down VGG16 classifier tail: flatten + fully fused 3-layer MLP."""

    def __init__(self, key, in_features=512, hidden=256, num_classes=64,
                 dtype=jnp.float32):
        k1, k2, k3, k4, k5, k6 = jax.random.split(key, 6)
        s1 = 1.0 / jnp.sqrt(in_features)
        s2 = 1.0 / jnp.sqrt(hidden)
        self.num_classes = num_classes
        # Weights stored as (K, N) so the kernel computes x @ W + b.
        self.w1 = jax.random.uniform(k1, (in_features, hidden), dtype, -s1, s1)
        self.b1 = jax.random.uniform(k2, (1, hidden), dtype, -s1, s1)
        self.w2 = jax.random.uniform(k3, (hidden, hidden), dtype, -s2, s2)
        self.b2 = jax.random.uniform(k4, (1, hidden), dtype, -s2, s2)
        self.w3 = jax.random.uniform(k5, (hidden, num_classes), dtype, -s2, s2)
        self.b3 = jax.random.uniform(k6, (1, num_classes), dtype, -s2, s2)
        # Zero-pad the last layer to a lane-dense (multiple-of-128) width so
        # the kernel's output stores are unmasked; wrapper slices it back.
        n_pad = pl.cdiv(num_classes, _LANE) * _LANE
        self.w3_pad = jnp.pad(self.w3, ((0, 0), (0, n_pad - num_classes)))
        self.b3_pad = jnp.pad(self.b3, ((0, 0), (0, n_pad - num_classes)))

    def __call__(self, x_nchw):
        # layout: NCHW input, flattened row-major to (B, C*H*W) like
        # torch.flatten(x, 1).  Dropout layers are identity in eval mode.
        B = x_nchw.shape[0]
        x = x_nchw.reshape(B, -1)
        y_pad = vgg16_tail_fused(x, self.w1, self.b1, self.w2, self.b2,
                                 self.w3_pad, self.b3_pad)
        return y_pad[:, : self.num_classes]


if __name__ == "__main__":
    key = jax.random.PRNGKey(0)
    kx, kp = jax.random.split(key)

    # Small NCHW input consistent with a VGG feature map: (B, C, H, W)
    B, C, H, W = 2, 32, 4, 4
    x = jax.random.normal(kx, (B, C, H, W), dtype=jnp.float32)

    model = Vgg16TailPallas(kp, in_features=C * H * W, hidden=256,
                            num_classes=64)

    out = model(x)
    out = jax.block_until_ready(out)

    # Pure-JAX reference check of the fused kernel.
    xf = x.reshape(B, -1)
    ref = jnp.maximum(xf @ model.w1 + model.b1, 0.0)
    ref = jnp.maximum(ref @ model.w2 + model.b2, 0.0)
    ref = ref @ model.w3 + model.b3
    assert out.shape == (B, 64)
    assert jnp.allclose(out, ref, atol=1e-4, rtol=1e-4)

    print("KERNEL_OK")
</pallas_src>

<mosaic_0001>
module attributes {stable_mosaic.version = 11 : i64} {
  func.func @_fused_tail_kernel(%arg0: i32, %arg1: memref<2x512xf32, #tpu.memory_space<vmem>>, %arg2: memref<512x256xf32, #tpu.memory_space<vmem>>, %arg3: memref<1x256xf32, #tpu.memory_space<vmem>>, %arg4: memref<256x256xf32, #tpu.memory_space<vmem>>, %arg5: memref<1x256xf32, #tpu.memory_space<vmem>>, %arg6: memref<256x128xf32, #tpu.memory_space<vmem>>, %arg7: memref<1x128xf32, #tpu.memory_space<vmem>>, %arg8: memref<2x128xf32, #tpu.memory_space<vmem>>) attributes {dimension_semantics = [#tpu.dimension_semantics<arbitrary>], iteration_bounds = array<i64: 1>, scalar_prefetch = 0 : i64, scratch_operands = 0 : i64, tpu.core_type = #tpu.core_type<tc>, window_params = [{pipeline_mode = #tpu.pipeline_mode<synchronous>, transform_indices = @transform_0, window_bounds = array<i64: 2, 512>}, {pipeline_mode = #tpu.pipeline_mode<synchronous>, transform_indices = @transform_1, window_bounds = array<i64: 512, 256>}, {pipeline_mode = #tpu.pipeline_mode<synchronous>, transform_indices = @transform_2, window_bounds = array<i64: 1, 256>}, {pipeline_mode = #tpu.pipeline_mode<synchronous>, transform_indices = @transform_3, window_bounds = array<i64: 256, 256>}, {pipeline_mode = #tpu.pipeline_mode<synchronous>, transform_indices = @transform_4, window_bounds = array<i64: 1, 256>}, {pipeline_mode = #tpu.pipeline_mode<synchronous>, transform_indices = @transform_5, window_bounds = array<i64: 256, 128>}, {pipeline_mode = #tpu.pipeline_mode<synchronous>, transform_indices = @transform_6, window_bounds = array<i64: 1, 128>}, {pipeline_mode = #tpu.pipeline_mode<synchronous>, transform_indices = @transform_7, window_bounds = array<i64: 2, 128>}]} {
    %c0 = arith.constant 0 : index
    %c0_0 = arith.constant 0 : index
    %0 = vector.load %arg1[%c0, %c0_0] : memref<2x512xf32, #tpu.memory_space<vmem>>, vector<2x512xf32>
    %c0_1 = arith.constant 0 : index
    %c0_2 = arith.constant 0 : index
    %1 = vector.load %arg2[%c0_1, %c0_2] : memref<512x256xf32, #tpu.memory_space<vmem>>, vector<512x256xf32>
    %cst = arith.constant dense<0.000000e+00> : vector<2x256xf32>
    %2 = tpu.matmul %0, %1, %cst {dimension_numbers = #tpu.dot_dimension_numbers<[1], [0], [0], [1], [0, 0, 1, 1], [], []>} : vector<2x512xf32>, vector<512x256xf32>, vector<2x256xf32> -> vector<2x256xf32>
    %c0_3 = arith.constant 0 : index
    %c0_4 = arith.constant 0 : index
    %3 = vector.load %arg3[%c0_3, %c0_4] : memref<1x256xf32, #tpu.memory_space<vmem>>, vector<1x256xf32>
    %4 = vector.broadcast %3 : vector<1x256xf32> to vector<2x256xf32>
    %5 = arith.addf %2, %4 : vector<2x256xf32>
    %cst_5 = arith.constant 0.000000e+00 : f32
    %6 = vector.broadcast %cst_5 : f32 to vector<2x256xf32>
    %7 = arith.maximumf %5, %6 : vector<2x256xf32>
    %c0_6 = arith.constant 0 : index
    %c0_7 = arith.constant 0 : index
    %8 = vector.load %arg4[%c0_6, %c0_7] : memref<256x256xf32, #tpu.memory_space<vmem>>, vector<256x256xf32>
    %cst_8 = arith.constant dense<0.000000e+00> : vector<2x256xf32>
    %9 = tpu.matmul %7, %8, %cst_8 {dimension_numbers = #tpu.dot_dimension_numbers<[1], [0], [0], [1], [0, 0, 1, 1], [], []>} : vector<2x256xf32>, vector<256x256xf32>, vector<2x256xf32> -> vector<2x256xf32>
    %c0_9 = arith.constant 0 : index
    %c0_10 = arith.constant 0 : index
    %10 = vector.load %arg5[%c0_9, %c0_10] : memref<1x256xf32, #tpu.memory_space<vmem>>, vector<1x256xf32>
    %11 = vector.broadcast %10 : vector<1x256xf32> to vector<2x256xf32>
    %12 = arith.addf %9, %11 : vector<2x256xf32>
    %cst_11 = arith.constant 0.000000e+00 : f32
    %13 = vector.broadcast %cst_11 : f32 to vector<2x256xf32>
    %14 = arith.maximumf %12, %13 : vector<2x256xf32>
    %c0_12 = arith.constant 0 : index
    %c0_13 = arith.constant 0 : index
    %15 = vector.load %arg6[%c0_12, %c0_13] : memref<256x128xf32, #tpu.memory_space<vmem>>, vector<256x128xf32>
    %cst_14 = arith.constant dense<0.000000e+00> : vector<2x128xf32>
    %16 = tpu.matmul %14, %15, %cst_14 {dimension_numbers = #tpu.dot_dimension_numbers<[1], [0], [0], [1], [0, 0, 1, 1], [], []>} : vector<2x256xf32>, vector<256x128xf32>, vector<2x128xf32> -> vector<2x128xf32>
    %c0_15 = arith.constant 0 : index
    %c0_16 = arith.constant 0 : index
    %17 = vector.load %arg7[%c0_15, %c0_16] : memref<1x128xf32, #tpu.memory_space<vmem>>, vector<1x128xf32>
    %18 = vector.broadcast %17 : vector<1x128xf32> to vector<2x128xf32>
    %19 = arith.addf %16, %18 : vector<2x128xf32>
    %c0_17 = arith.constant 0 : index
    %c0_18 = arith.constant 0 : index
    %20 = vector.load %arg8[%c0_17, %c0_18] : memref<2x128xf32, #tpu.memory_space<vmem>>, vector<2x128xf32>
    tpu.vector_store %arg8[%c0_17, %c0_18], %19 {strides = array<i32>} : memref<2x128xf32, #tpu.memory_space<vmem>>, vector<2x128xf32>,
    return
  }
  func.func @transform_0(%arg0: i32) -> (i32, i32) {
    %c0_i32 = arith.constant 0 : i32
    %c0_i32_0 = arith.constant 0 : i32
    %c0_i32_1 = arith.constant 0 : i32
    return %c0_i32, %c0_i32_0 : i32, i32
  }
  func.func @transform_1(%arg0: i32) -> (i32, i32) {
    %c0_i32 = arith.constant 0 : i32
    %c0_i32_0 = arith.constant 0 : i32
    %c0_i32_1 = arith.constant 0 : i32
    return %c0_i32, %c0_i32_0 : i32, i32
  }
  func.func @transform_2(%arg0: i32) -> (i32, i32) {
    %c0_i32 = arith.constant 0 : i32
    %c0_i32_0 = arith.constant 0 : i32
    %c0_i32_1 = arith.constant 0 : i32
    return %c0_i32, %c0_i32_0 : i32, i32
  }
  func.func @transform_3(%arg0: i32) -> (i32, i32) {
    %c0_i32 = arith.constant 0 : i32
    %c0_i32_0 = arith.constant 0 : i32
    %c0_i32_1 = arith.constant 0 : i32
    return %c0_i32, %c0_i32_0 : i32, i32
  }
  func.func @transform_4(%arg0: i32) -> (i32, i32) {
    %c0_i32 = arith.constant 0 : i32
    %c0_i32_0 = arith.constant 0 : i32
    %c0_i32_1 = arith.constant 0 : i32
    return %c0_i32, %c0_i32_0 : i32, i32
  }
  func.func @transform_5(%arg0: i32) -> (i32, i32) {
    %c0_i32 = arith.constant 0 : i32
    %c0_i32_0 = arith.constant 0 : i32
    %c0_i32_1 = arith.constant 0 : i32
    return %c0_i32, %c0_i32_0 : i32, i32
  }
  func.func @transform_6(%arg0: i32) -> (i32, i32) {
    %c0_i32 = arith.constant 0 : i32
    %c0_i32_0 = arith.constant 0 : i32
    %c0_i32_1 = arith.constant 0 : i32
    return %c0_i32, %c0_i32_0 : i32, i32
  }
  func.func @transform_7(%arg0: i32) -> (i32, i32) {
    %c0_i32 = arith.constant 0 : i32
    %c0_i32_0 = arith.constant 0 : i32
    %c0_i32_1 = arith.constant 0 : i32
    return %c0_i32, %c0_i32_0 : i32, i32
  }
}

</mosaic_0001>

<bundles_post_ra>
// kernel: tpu_custom_call.1
= control target key start
LH: loop header
LB: loop body
LE: loop exit
PB: predicated region body
PF: predicated region fallthrough
CT: control target
= control target key end

     0   :  { %12 = vsyncpa [#allocation3], 0  ;;  %s897_s0 = inlined_call_operand.hbm [shape: f32[2,512], index: 0, kind: input, shape index: {}]   ;;  %s898_s1 = inlined_call_operand.hbm [shape: f32[512,256], index: 1, kind: input, shape index: {}]   ;;  %s899_s2 = inlined_call_operand.vmem [shape: f32[1,256], index: 2, kind: input, shape index: {}]   ;;  %s900_s3 = inlined_call_operand.hbm [shape: f32[256,256], index: 3, kind: input, shape index: {}]   ;;  %s901_s4 = inlined_call_operand.vmem [shape: f32[1,256], index: 4, kind: input, shape index: {}]   ;;  %s902_s5 = inlined_call_operand.hbm [shape: f32[256,128], index: 5, kind: input, shape index: {}]   ;;  %s903_s6 = inlined_call_operand.vmem [shape: f32[1,128], index: 6, kind: input, shape index: {}]   ;;  %s904_s7 = inlined_call_operand.hbm [shape: f32[2,128], index: 7, kind: output, shape index: {}]  }
   0x1   :  { %13 = vsyncpa [#allocation6], 0 }
   0x2   :  { %14 = vsyncpa [#allocation9], 0 }
   0x3   :  { %15 = vsyncpa [#allocation4], 0  ;;  %s818_s24 = smov [#allocation5]  }
   0x4   :  { %s31_s25 = sshll.u32 %s818_s24, 4  ;;  %s32_s25 = int_to_ptr.vmem [resolvable:$true] %s31_s25 }
   0x5   :  { %s718_s26 = scalar_lea.vmem %s32_s25, 16384  ;;  %p723_p1 = scmp.lt.s32.totalorder %s32_s25, %s32_s25 }
   0x6   :  { %p719_p0 = scmp.ne.s32.totalorder %s32_s25, %s718_s26  ;;  %p724_p2 = scmp.lt.s32.totalorder %s718_s26, %s718_s26 }
   0x8   :  { %p725_p3 = por %p724_p2, %p723_p1 }
   0xa   :  { %p726_p4 = pnand %p725_p3, %p719_p0 }
   0xc   :  { %729 = shalt.err (!%p726_p4)
}
   0xd   :  { %s819_s27 = smov 256   ;;  %s820_s28 = smov 16  }
   0xe   :  { %37 = dma.hbm_to_vmem [thread:$0]  %s898_s1, 16384, %s32_s25, [#allocation6], %s819_s27, %s819_s27, %s820_s28  }
   0xf   :  { %s821_s8 = smov [#allocation2]   ;;  %s822_s10 = smov [#allocation7]  }
  0x10   :  { %s22_s9 = sshll.u32 %s821_s8, 4  ;;  %s45_s11 = sshll.u32 %s822_s10, 4  ;;  %s23_s9 = int_to_ptr.vmem [resolvable:$true] %s22_s9  ;;  %s46_s11 = int_to_ptr.vmem [resolvable:$true] %s45_s11 }
  0x11   :  { %s738_s12 = scalar_lea.vmem %s23_s9, 128  ;;  %p743_p6 = scmp.lt.s32.totalorder %s23_s9, %s23_s9 }
  0x12   :  { %p739_p5 = scmp.ne.s32.totalorder %s23_s9, %s738_s12  ;;  %p744_p7 = scmp.lt.s32.totalorder %s738_s12, %s738_s12 }
  0x14   :  { %p745_p8 = por %p744_p7, %p743_p6 }
  0x16   :  { %p746_p9 = pnand %p745_p8, %p739_p5 }
  0x18   :  { %749 = shalt.err (!%p746_p9)
}
  0x19   :  { %25 = dma.hbm_to_vmem [thread:$0]  %s897_s0, 128, %s23_s9, [#allocation3]  }
  0x1a   :  { %s758_s15 = scalar_lea.vmem %s46_s11, 8192  ;;  %p763_p11 = scmp.lt.s32.totalorder %s46_s11, %s46_s11 }
  0x1b   :  { %p759_p10 = scmp.ne.s32.totalorder %s46_s11, %s758_s15  ;;  %p764_p12 = scmp.lt.s32.totalorder %s758_s15, %s758_s15 }
  0x1d   :  { %p765_p13 = por %p764_p12, %p763_p11 }
  0x1f   :  { %p766_p0 = pnand %p765_p13, %p759_p10 }
  0x21   :  { %769 = shalt.err (!%p766_p0)
}
  0x22   :  { %51 = dma.hbm_to_vmem [thread:$0]  %s900_s3, 8192, %s46_s11, [#allocation6], %s819_s27, %s819_s27, %s820_s28  }
  0x23   :  { %s823_s17 = smov [#allocation8]  }
  0x24   :  { %s59_s18 = sshll.u32 %s823_s17, 4  ;;  %s60_s18 = int_to_ptr.vmem [resolvable:$true] %s59_s18 }
  0x25   :  { %s778_s19 = scalar_lea.vmem %s60_s18, 4096  ;;  %p783_p2 = scmp.lt.s32.totalorder %s60_s18, %s60_s18 }
  0x26   :  { %p779_p1 = scmp.ne.s32.totalorder %s60_s18, %s778_s19  ;;  %p784_p3 = scmp.lt.s32.totalorder %s778_s19, %s778_s19 }
  0x28   :  { %p785_p4 = por %p784_p3, %p783_p2 }
  0x2a   :  { %p786_p5 = pnand %p785_p4, %p779_p1 }
  0x2c   :  { %789 = shalt.err (!%p786_p5)
}
  0x2d   :  { %s824_s0 = smov 128   ;;  %s825_s20 = smov 8  }
  0x2e   :  { %65 = dma.hbm_to_vmem [thread:$0]  %s902_s5, 4096, %s60_s18, [#allocation9], %s824_s0, %s824_s0, %s825_s20  }
  0x2f   :  { %810 = dma.done.wait [#allocation3], 128  }
  0x30   :  { %811 = vsyncadd [#allocation3], 4294967168 }
  0x31   :  { %812 = dma.done.wait [#allocation6], 24576  }
  0x32   :  { %813 = vsyncadd [#allocation6], 4294942720 }
  0x33   :  { %814 = dma.done.wait [#allocation9], 4096  }
  0x34   :  { %815 = vsyncadd [#allocation9], 4294963200  ;;  %v112_v0 = vld [vmem:[#allocation5 + $0xf8] sm:$0xff]  ;;  %v111_v2 = vld [vmem:[#allocation5 + $0xf0] sm:$0xff]  ;;  %s827_s26 = smov [#allocation10]  }
  0x35   :  { %v176_v1 = vld [vmem:[#allocation5 + $0x2f8] sm:$0xff]  ;;  %243 = vmatprep.subr.mxu0 %v112_v0  ;;  %v175_v3 = vld [vmem:[#allocation5 + $0x2f0] sm:$0xff]  ;;  %v110_v4 = vld [vmem:[#allocation5 + $0xe8] sm:$0xff]  ;;  %s652_s27 = sshll.u32 %s827_s26, 4  ;;  %s653_s27 = int_to_ptr.vmem [resolvable:$true] %s652_s27 }
  0x36   :  { %314 = vmatprep.subr.mxu1 %v176_v1  ;;  %v174_v5 = vld [vmem:[#allocation5 + $0x2e8] sm:$0xff]  ;;  %244 = vmatpush1.msra.mxu0 %v111_v2  ;;  %v109_v6 = vld [vmem:[#allocation5 + $0xe0] sm:$0xff]  ;;  %v108_v8 = vld [vmem:[#allocation5 + $0xd8] sm:$0xff]  ;;  %p795_p7 = scmp.lt.s32.totalorder %s653_s27, %s653_s27 }
  0x37   :  { %315 = vmatpush1.msra.mxu1 %v175_v3  ;;  %v173_v7 = vld [vmem:[#allocation5 + $0x2e0] sm:$0xff]  ;;  %245 = vmatprep.subr.mxu0 %v110_v4  ;;  %v172_v9 = vld [vmem:[#allocation5 + $0x2d8] sm:$0xff]  ;;  %v107_v10 = vld [vmem:[#allocation5 + $0xd0] sm:$0xff] }
  0x38   :  { %316 = vmatprep.subr.mxu1 %v174_v5  ;;  %v171_v11 = vld [vmem:[#allocation5 + $0x2d0] sm:$0xff]  ;;  %246 = vmatpush1.msra.mxu0 %v109_v6  ;;  %v106_v12 = vld [vmem:[#allocation5 + $0xc8] sm:$0xff]  ;;  %v105_v14 = vld [vmem:[#allocation5 + $0xc0] sm:$0xff] }
  0x39   :  { %317 = vmatpush1.msra.mxu1 %v173_v7  ;;  %v170_v13 = vld [vmem:[#allocation5 + $0x2c8] sm:$0xff]  ;;  %247 = vmatprep.subr.mxu0 %v108_v8  ;;  %v169_v15 = vld [vmem:[#allocation5 + $0x2c0] sm:$0xff]  ;;  %v104_v16 = vld [vmem:[#allocation5 + $0xb8] sm:$0xff] }
  0x3a   :  { %318 = vmatprep.subr.mxu1 %v172_v9  ;;  %248 = vmatpush1.msra.mxu0 %v107_v10  ;;  %v168_v17 = vld [vmem:[#allocation5 + $0x2b8] sm:$0xff]  ;;  %v103_v18 = vld [vmem:[#allocation5 + $0xb0] sm:$0xff]  ;;  %v102_v20 = vld [vmem:[#allocation5 + $0xa8] sm:$0xff] }
  0x3b   :  { %319 = vmatpush1.msra.mxu1 %v171_v11  ;;  %249 = vmatprep.subr.mxu0 %v106_v12  ;;  %v167_v19 = vld [vmem:[#allocation5 + $0x2b0] sm:$0xff]  ;;  %v166_v21 = vld [vmem:[#allocation5 + $0x2a8] sm:$0xff]  ;;  %v101_v22 = vld [vmem:[#allocation5 + $0xa0] sm:$0xff] }
  0x3c   :  { %320 = vmatprep.subr.mxu1 %v170_v13  ;;  %250 = vmatpush1.msra.mxu0 %v105_v14  ;;  %v165_v23 = vld [vmem:[#allocation5 + $0x2a0] sm:$0xff]  ;;  %v100_v24 = vld [vmem:[#allocation5 + $0x98] sm:$0xff]  ;;  %v99_v26 = vld [vmem:[#allocation5 + $0x90] sm:$0xff] }
  0x3d   :  { %321 = vmatpush1.msra.mxu1 %v169_v15  ;;  %251 = vmatprep.subr.mxu0 %v104_v16  ;;  %v164_v25 = vld [vmem:[#allocation5 + $0x298] sm:$0xff]  ;;  %v163_v27 = vld [vmem:[#allocation5 + $0x290] sm:$0xff]  ;;  %v98_v28 = vld [vmem:[#allocation5 + $0x88] sm:$0xff] }
  0x3e   :  { %322 = vmatprep.subr.mxu1 %v168_v17  ;;  %252 = vmatpush1.msra.mxu0 %v103_v18  ;;  %v162_v29 = vld [vmem:[#allocation5 + $0x288] sm:$0xff]  ;;  %v97_v30 = vld [vmem:[#allocation5 + $0x80] sm:$0xff]  ;;  %v96_v32 = vld [vmem:[#allocation5 + $0x78] sm:$0xff] }
  0x3f   :  { %323 = vmatpush1.msra.mxu1 %v167_v19  ;;  %253 = vmatprep.subr.mxu0 %v102_v20  ;;  %v161_v31 = vld [vmem:[#allocation5 + $0x280] sm:$0xff]  ;;  %v160_v33 = vld [vmem:[#allocation5 + $0x278] sm:$0xff]  ;;  %v95_v34 = vld [vmem:[#allocation5 + $0x70] sm:$0xff] }
  0x40   :  { %324 = vmatprep.subr.mxu1 %v166_v21  ;;  %254 = vmatpush1.msra.mxu0 %v101_v22  ;;  %v159_v35 = vld [vmem:[#allocation5 + $0x270] sm:$0xff]  ;;  %v94_v36 = vld [vmem:[#allocation5 + $0x68] sm:$0xff]  ;;  %v93_v38 = vld [vmem:[#allocation5 + $0x60] sm:$0xff] }
  0x41   :  { %325 = vmatpush1.msra.mxu1 %v165_v23  ;;  %255 = vmatprep.subr.mxu0 %v100_v24  ;;  %v158_v37 = vld [vmem:[#allocation5 + $0x268] sm:$0xff]  ;;  %v157_v39 = vld [vmem:[#allocation5 + $0x260] sm:$0xff]  ;;  %v92_v40 = vld [vmem:[#allocation5 + $0x58] sm:$0xff] }
  0x42   :  { %326 = vmatprep.subr.mxu1 %v164_v25  ;;  %256 = vmatpush1.msra.mxu0 %v99_v26  ;;  %v156_v41 = vld [vmem:[#allocation5 + $0x258] sm:$0xff]  ;;  %v91_v42 = vld [vmem:[#allocation5 + $0x50] sm:$0xff]  ;;  %v90_v44 = vld [vmem:[#allocation5 + $0x48] sm:$0xff] }
  0x43   :  { %327 = vmatpush1.msra.mxu1 %v163_v27  ;;  %257 = vmatprep.subr.mxu0 %v98_v28  ;;  %v155_v43 = vld [vmem:[#allocation5 + $0x250] sm:$0xff]  ;;  %v154_v45 = vld [vmem:[#allocation5 + $0x248] sm:$0xff]  ;;  %v89_v46 = vld [vmem:[#allocation5 + $0x40] sm:$0xff] }
  0x44   :  { %328 = vmatprep.subr.mxu1 %v162_v29  ;;  %258 = vmatpush1.msra.mxu0 %v97_v30  ;;  %v153_v47 = vld [vmem:[#allocation5 + $0x240] sm:$0xff]  ;;  %v88_v48 = vld [vmem:[#allocation5 + $0x38] sm:$0xff]  ;;  %v87_v50 = vld [vmem:[#allocation5 + $0x30] sm:$0xff]  ;;  %v211_v30 = vlaneseq }
  0x45   :  { %329 = vmatpush1.msra.mxu1 %v161_v31  ;;  %259 = vmatprep.subr.mxu0 %v96_v32  ;;  %v152_v49 = vld [vmem:[#allocation5 + $0x238] sm:$0xff]  ;;  %v151_v51 = vld [vmem:[#allocation5 + $0x230] sm:$0xff]  ;;  %v86_v52 = vld [vmem:[#allocation5 + $0x28] sm:$0xff]  ;;  %v826_v31 = vmov 1983009808  }
  0x46   :  { %330 = vmatprep.subr.mxu1 %v160_v33  ;;  %260 = vmatpush1.msra.mxu0 %v95_v34  ;;  %v150_v53 = vld [vmem:[#allocation5 + $0x228] sm:$0xff]  ;;  %v85_v54 = vld [vmem:[#allocation5 + $0x20] sm:$0xff]  ;;  %v84_v56 = vld [vmem:[#allocation5 + $0x18] sm:$0xff]  ;;  %v224_v32 = vunpack.c.l.s4 %v826_v31 }
  0x47   :  { %331 = vmatpush1.msra.mxu1 %v159_v35  ;;  %261 = vmatprep.subr.mxu0 %v94_v36  ;;  %v149_v55 = vld [vmem:[#allocation5 + $0x220] sm:$0xff]  ;;  %v148_v57 = vld [vmem:[#allocation5 + $0x218] sm:$0xff]  ;;  %v83_v58 = vld [vmem:[#allocation5 + $0x10] sm:$0xff] }
  0x48   :  { %332 = vmatprep.subr.mxu1 %v158_v37  ;;  %262 = vmatpush1.msra.mxu0 %v93_v38  ;;  %v147_v59 = vld [vmem:[#allocation5 + $0x210] sm:$0xff]  ;;  %v82_v60 = vld [vmem:[#allocation5 + $0x8] sm:$0xff]  ;;  %v81_v62 = vld [vmem:[#allocation5] sm:$0xff] }
  0x49   :  { %333 = vmatpush1.msra.mxu1 %v157_v39  ;;  %263 = vmatprep.subr.mxu0 %v92_v40  ;;  %v146_v61 = vld [vmem:[#allocation5 + $0x208] sm:$0xff]  ;;  %v145_v63 = vld [vmem:[#allocation5 + $0x200] sm:$0xff]  ;;  %v144_v0 = vld [vmem:[#allocation5 + $0x1f8] sm:$0xff] }
  0x4a   :  { %334 = vmatprep.subr.mxu1 %v156_v41  ;;  %264 = vmatpush1.msra.mxu0 %v91_v42  ;;  %v208_v1 = vld [vmem:[#allocation5 + $0x3f8] sm:$0xff]  ;;  %v143_v2 = vld [vmem:[#allocation5 + $0x1f0] sm:$0xff]  ;;  %v142_v4 = vld [vmem:[#allocation5 + $0x1e8] sm:$0xff]  ;;  %v880_v41 = vshrl.u32 %v211_v30, 7  ;;  %v225_v42 = vunpack.c.0.s8 %v224_v32 }
  0x4b   :  { %335 = vmatpush1.msra.mxu1 %v155_v43  ;;  %265 = vmatprep.subr.mxu0 %v90_v44  ;;  %v207_v3 = vld [vmem:[#allocation5 + $0x3f0] sm:$0xff]  ;;  %v206_v5 = vld [vmem:[#allocation5 + $0x3e8] sm:$0xff]  ;;  %v141_v6 = vld [vmem:[#allocation5 + $0x1e0] sm:$0xff] }
  0x4c   :  { %336 = vmatprep.subr.mxu1 %v154_v45  ;;  %266 = vmatpush1.msra.mxu0 %v89_v46  ;;  %v205_v7 = vld [vmem:[#allocation5 + $0x3e0] sm:$0xff]  ;;  %v140_v8 = vld [vmem:[#allocation5 + $0x1d8] sm:$0xff]  ;;  %v139_v10 = vld [vmem:[#allocation5 + $0x1d0] sm:$0xff] }
  0x4d   :  { %337 = vmatpush1.msra.mxu1 %v153_v47  ;;  %267 = vmatprep.subr.mxu0 %v88_v48  ;;  %v204_v9 = vld [vmem:[#allocation5 + $0x3d8] sm:$0xff]  ;;  %v203_v11 = vld [vmem:[#allocation5 + $0x3d0] sm:$0xff]  ;;  %v138_v12 = vld [vmem:[#allocation5 + $0x1c8] sm:$0xff] }
  0x4e   :  { %338 = vmatprep.subr.mxu1 %v152_v49  ;;  %268 = vmatpush1.msra.mxu0 %v87_v50  ;;  %v202_v13 = vld [vmem:[#allocation5 + $0x3c8] sm:$0xff]  ;;  %v137_v14 = vld [vmem:[#allocation5 + $0x1c0] sm:$0xff]  ;;  %v136_v16 = vld [vmem:[#allocation5 + $0x1b8] sm:$0xff] }
  0x4f   :  { %339 = vmatpush1.msra.mxu1 %v151_v51  ;;  %269 = vmatprep.subr.mxu0 %v86_v52  ;;  %v201_v15 = vld [vmem:[#allocation5 + $0x3c0] sm:$0xff]  ;;  %v200_v17 = vld [vmem:[#allocation5 + $0x3b8] sm:$0xff]  ;;  %v135_v18 = vld [vmem:[#allocation5 + $0x1b0] sm:$0xff]  ;;  %v228_v52 = vsub.s32 %v225_v42, %v880_v41 }
  0x50   :  { %340 = vmatprep.subr.mxu1 %v150_v53  ;;  %270 = vmatpush1.msra.mxu0 %v85_v54  ;;  %v199_v19 = vld [vmem:[#allocation5 + $0x3b0] sm:$0xff]  ;;  %v134_v20 = vld [vmem:[#allocation5 + $0x1a8] sm:$0xff]  ;;  %v133_v22 = vld [vmem:[#allocation5 + $0x1a0] sm:$0xff] }
  0x51   :  { %341 = vmatpush1.msra.mxu1 %v149_v55  ;;  %271 = vmatprep.subr.mxu0 %v84_v56  ;;  %v198_v21 = vld [vmem:[#allocation5 + $0x3a8] sm:$0xff]  ;;  %v197_v23 = vld [vmem:[#allocation5 + $0x3a0] sm:$0xff]  ;;  %v132_v24 = vld [vmem:[#allocation5 + $0x198] sm:$0xff] }
  0x52   :  { %342 = vmatprep.subr.mxu1 %v148_v57  ;;  %272 = vmatpush1.msra.mxu0 %v83_v58  ;;  %v196_v25 = vld [vmem:[#allocation5 + $0x398] sm:$0xff]  ;;  %v131_v26 = vld [vmem:[#allocation5 + $0x190] sm:$0xff]  ;;  %v130_v28 = vld [vmem:[#allocation5 + $0x188] sm:$0xff] }
  0x53   :  { %343 = vmatpush1.msra.mxu1 %v147_v59  ;;  %273 = vmatprep.subr.mxu0 %v82_v60  ;;  %v195_v27 = vld [vmem:[#allocation5 + $0x390] sm:$0xff]  ;;  %v194_v29 = vld [vmem:[#allocation5 + $0x388] sm:$0xff]  ;;  %v129_v33 = vld [vmem:[#allocation5 + $0x180] sm:$0xff] }
  0x54   :  { %344 = vmatprep.subr.mxu1 %v146_v61  ;;  %274 = vmatpush1.msra.mxu0 %v81_v62  ;;  %v193_v34 = vld [vmem:[#allocation5 + $0x380] sm:$0xff]  ;;  %v128_v35 = vld [vmem:[#allocation5 + $0x178] sm:$0xff]  ;;  %v127_v37 = vld [vmem:[#allocation5 + $0x170] sm:$0xff] }
  0x55   :  { %345 = vmatpush1.msra.mxu1 %v145_v63  ;;  %275 = vmatprep.subr.mxu0 %v144_v0  ;;  %v192_v36 = vld [vmem:[#allocation5 + $0x378] sm:$0xff]  ;;  %v191_v38 = vld [vmem:[#allocation5 + $0x370] sm:$0xff]  ;;  %v126_v39 = vld [vmem:[#allocation5 + $0x168] sm:$0xff] }
  0x56   :  { %346 = vmatprep.subr.mxu1 %v208_v1  ;;  %276 = vmatpush2.msra.mxu0 %v143_v2  ;;  %v190_v40 = vld [vmem:[#allocation5 + $0x368] sm:$0xff]  ;;  %v125_v43 = vld [vmem:[#allocation5 + $0x160] sm:$0xff]  ;;  %v124_v45 = vld [vmem:[#allocation5 + $0x158] sm:$0xff] }
  0x57   :  { %347 = vmatpush2.msra.mxu1 %v207_v3  ;;  %277 = vmatprep.subr.mxu0 %v142_v4  ;;  %v189_v44 = vld [vmem:[#allocation5 + $0x360] sm:$0xff]  ;;  %v188_v46 = vld [vmem:[#allocation5 + $0x358] sm:$0xff]  ;;  %v123_v48 = vld [vmem:[#allocation5 + $0x150] sm:$0xff] }
  0x58   :  { %348 = vmatprep.subr.mxu1 %v206_v5  ;;  %278 = vmatpush2.msra.mxu0 %v141_v6  ;;  %v80_v47 = vld [vmem:[#allocation2] sm:$0xff]  ;;  %v187_v49 = vld [vmem:[#allocation5 + $0x350] sm:$0xff]  ;;  %v122_v50 = vld [vmem:[#allocation5 + $0x148] sm:$0xff] }
  0x59   :  { %349 = vmatpush2.msra.mxu1 %v205_v7  ;;  %279 = vmatprep.subr.mxu0 %v140_v8  ;;  %v186_v51 = vld [vmem:[#allocation5 + $0x348] sm:$0xff]  ;;  %v121_v53 = vld [vmem:[#allocation5 + $0x140] sm:$0xff]  ;;  %v222_v55 = vcombine.high %v80_v47, %v80_v47  ;;  %v120_v56 = vld [vmem:[#allocation5 + $0x138] sm:$0xff]  ;;  %v229_v62 = vrot.slane %v80_v47, %v228_v52 }
  0x5a   :  { %350 = vmatprep.subr.mxu1 %v204_v9  ;;  %280 = vmatpush2.msra.mxu0 %v139_v10  ;;  %v185_v54 = vld [vmem:[#allocation5 + $0x340] sm:$0xff]  ;;  %v184_v57 = vld [vmem:[#allocation5 + $0x338] sm:$0xff]  ;;  %v119_v58 = vld [vmem:[#allocation5 + $0x130] sm:$0xff] }
  0x5b   :  { %351 = vmatpush2.msra.mxu1 %v203_v11  ;;  %281 = vmatprep.subr.mxu0 %v138_v12  ;;  %v183_v59 = vld [vmem:[#allocation5 + $0x330] sm:$0xff]  ;;  %v118_v60 = vld [vmem:[#allocation5 + $0x128] sm:$0xff]  ;;  %v117_v63 = vld [vmem:[#allocation5 + $0x120] sm:$0xff]  ;;  %v236_v1 = vrot.slane %v222_v55, %v228_v52  ;;  %v237_v8 = vcombine.high %v229_v62, %v229_v62 }
  0x5c   :  { %352 = vmatprep.subr.mxu1 %v202_v13  ;;  %282 = vmatpush2.msra.mxu0 %v137_v14  ;;  %v182_v61 = vld [vmem:[#allocation5 + $0x328] sm:$0xff]  ;;  %v181_v0 = vld [vmem:[#allocation5 + $0x320] sm:$0xff]  ;;  %v116_v2 = vld [vmem:[#allocation5 + $0x118] sm:$0xff] }
  0x5d   :  { %353 = vmatpush2.msra.mxu1 %v201_v15  ;;  %283 = vmatprep.subr.mxu0 %v136_v16  ;;  %v180_v3 = vld [vmem:[#allocation5 + $0x318] sm:$0xff]  ;;  %v115_v4 = vld [vmem:[#allocation5 + $0x110] sm:$0xff]  ;;  %v114_v6 = vld [vmem:[#allocation5 + $0x108] sm:$0xff]  ;;  %v238_v10 = vcombine.high %v236_v1, %v236_v1 }
  0x5e   :  { %354 = vmatprep.subr.mxu1 %v200_v17  ;;  %284 = vmatpush2.msra.mxu0 %v135_v18  ;;  %v179_v5 = vld [vmem:[#allocation5 + $0x310] sm:$0xff]  ;;  %v178_v7 = vld [vmem:[#allocation5 + $0x308] sm:$0xff]  ;;  %v113_v9 = vld [vmem:[#allocation5 + $0x100] sm:$0xff] }
  0x5f   :  { %355 = vmatpush2.msra.mxu1 %v199_v19  ;;  %285 = vmatprep.subr.mxu0 %v134_v20  ;;  %v177_v11 = vld [vmem:[#allocation5 + $0x300] sm:$0xff]  ;;  %v418_v12 = vld [vmem:[#allocation7 + $0xf8] sm:$0xff]  ;;  %v417_v13 = vld [vmem:[#allocation7 + $0xf0] sm:$0xff] }
  0x60   :  { %356 = vmatprep.subr.mxu1 %v198_v21  ;;  %286 = vmatpush2.msra.mxu0 %v133_v22  ;;  %v416_v14 = vld [vmem:[#allocation7 + $0xe8] sm:$0xff]  ;;  %v415_v15 = vld [vmem:[#allocation7 + $0xe0] sm:$0xff]  ;;  %v414_v16 = vld [vmem:[#allocation7 + $0xd8] sm:$0xff] }
  0x61   :  { %357 = vmatpush2.msra.mxu1 %v197_v23  ;;  %287 = vmatprep.subr.mxu0 %v132_v24  ;;  %v413_v17 = vld [vmem:[#allocation7 + $0xd0] sm:$0xff]  ;;  %v412_v18 = vld [vmem:[#allocation7 + $0xc8] sm:$0xff]  ;;  %v411_v19 = vld [vmem:[#allocation7 + $0xc0] sm:$0xff] }
  0x62   :  { %358 = vmatprep.subr.mxu1 %v196_v25  ;;  %288 = vmatpush2.msra.mxu0 %v131_v26  ;;  %v410_v20 = vld [vmem:[#allocation7 + $0xb8] sm:$0xff]  ;;  %v409_v21 = vld [vmem:[#allocation7 + $0xb0] sm:$0xff]  ;;  %v408_v22 = vld [vmem:[#allocation7 + $0xa8] sm:$0xff] }
  0x63   :  { %359 = vmatpush2.msra.mxu1 %v195_v27  ;;  %289 = vmatprep.subr.mxu0 %v130_v28  ;;  %v407_v23 = vld [vmem:[#allocation7 + $0xa0] sm:$0xff]  ;;  %v406_v24 = vld [vmem:[#allocation7 + $0x98] sm:$0xff]  ;;  %v405_v25 = vld [vmem:[#allocation7 + $0x90] sm:$0xff] }
  0x64   :  { %360 = vmatprep.subr.mxu1 %v194_v29  ;;  %290 = vmatpush2.msra.mxu0 %v129_v33  ;;  %v404_v26 = vld [vmem:[#allocation7 + $0x88] sm:$0xff]  ;;  %v403_v27 = vld [vmem:[#allocation7 + $0x80] sm:$0xff]  ;;  %v402_v28 = vld [vmem:[#allocation7 + $0x78] sm:$0xff] }
  0x65   :  { %361 = vmatpush2.msra.mxu1 %v193_v34  ;;  %291 = vmatprep.subr.mxu0 %v128_v35  ;;  %v401_v29 = vld [vmem:[#allocation7 + $0x70] sm:$0xff]  ;;  %v400_v30 = vld [vmem:[#allocation7 + $0x68] sm:$0xff]  ;;  %v399_v31 = vld [vmem:[#allocation7 + $0x60] sm:$0xff] }
  0x66   :  { %362 = vmatprep.subr.mxu1 %v192_v36  ;;  %292 = vmatpush2.msra.mxu0 %v127_v37  ;;  %v398_v32 = vld [vmem:[#allocation7 + $0x58] sm:$0xff]  ;;  %v397_v33 = vld [vmem:[#allocation7 + $0x50] sm:$0xff]  ;;  %v396_v34 = vld [vmem:[#allocation7 + $0x48] sm:$0xff] }
  0x67   :  { %363 = vmatpush2.msra.mxu1 %v191_v38  ;;  %293 = vmatprep.subr.mxu0 %v126_v39  ;;  %v395_v35 = vld [vmem:[#allocation7 + $0x40] sm:$0xff]  ;;  %v394_v36 = vld [vmem:[#allocation7 + $0x38] sm:$0xff]  ;;  %v393_v37 = vld [vmem:[#allocation7 + $0x30] sm:$0xff] }
  0x68   :  { %364 = vmatprep.subr.mxu1 %v190_v40  ;;  %294 = vmatpush2.msra.mxu0 %v125_v43  ;;  %v392_v38 = vld [vmem:[#allocation7 + $0x28] sm:$0xff]  ;;  %v391_v39 = vld [vmem:[#allocation7 + $0x20] sm:$0xff]  ;;  %v390_v40 = vld [vmem:[#allocation7 + $0x18] sm:$0xff] }
  0x69   :  { %365 = vmatpush2.msra.mxu1 %v189_v44  ;;  %295 = vmatprep.subr.mxu0 %v124_v45  ;;  %v389_v42 = vld [vmem:[#allocation7 + $0x10] sm:$0xff]  ;;  %v388_v43 = vld [vmem:[#allocation7 + $0x8] sm:$0xff]  ;;  %v387_v44 = vld [vmem:[#allocation7] sm:$0xff] }
  0x6a   :  { %366 = vmatprep.subr.mxu1 %v188_v46  ;;  %296 = vmatpush2.msra.mxu0 %v123_v48  ;;  %v450_v45 = vld [vmem:[#allocation7 + $0x1f8] sm:$0xff]  ;;  %v449_v46 = vld [vmem:[#allocation7 + $0x1f0] sm:$0xff]  ;;  %v448_v47 = vld [vmem:[#allocation7 + $0x1e8] sm:$0xff] }
  0x6b   :  { %367 = vmatpush2.msra.mxu1 %v187_v49  ;;  %297 = vmatprep.subr.mxu0 %v122_v50  ;;  %v447_v48 = vld [vmem:[#allocation7 + $0x1e0] sm:$0xff]  ;;  %v446_v49 = vld [vmem:[#allocation7 + $0x1d8] sm:$0xff]  ;;  %v445_v50 = vld [vmem:[#allocation7 + $0x1d0] sm:$0xff] }
  0x6c   :  { %368 = vmatprep.subr.mxu1 %v186_v51  ;;  %298 = vmatpush2.msra.mxu0 %v121_v53  ;;  %v444_v51 = vld [vmem:[#allocation7 + $0x1c8] sm:$0xff]  ;;  %v443_v52 = vld [vmem:[#allocation7 + $0x1c0] sm:$0xff]  ;;  %v442_v53 = vld [vmem:[#allocation7 + $0x1b8] sm:$0xff] }
  0x6d   :  { %369 = vmatpush2.msra.mxu1 %v185_v54  ;;  %299 = vmatprep.subr.mxu0 %v120_v56  ;;  %v441_v54 = vld [vmem:[#allocation7 + $0x1b0] sm:$0xff]  ;;  %v440_v55 = vld [vmem:[#allocation7 + $0x1a8] sm:$0xff]  ;;  %v439_v56 = vld [vmem:[#allocation7 + $0x1a0] sm:$0xff] }
  0x6e   :  { %370 = vmatprep.subr.mxu1 %v184_v57  ;;  %300 = vmatpush2.msra.mxu0 %v119_v58  ;;  %v438_v57 = vld [vmem:[#allocation7 + $0x198] sm:$0xff]  ;;  %v437_v58 = vld [vmem:[#allocation7 + $0x190] sm:$0xff] }
  0x6f   :  { %371 = vmatpush2.msra.mxu1 %v183_v59  ;;  %301 = vmatprep.subr.mxu0 %v118_v60  ;;  %v436_v59 = vld [vmem:[#allocation7 + $0x188] sm:$0xff]  ;;  %v435_v60 = vld [vmem:[#allocation7 + $0x180] sm:$0xff] }
  0x70   :  { %372 = vmatprep.subr.mxu1 %v182_v61  ;;  %302 = vmatpush2.msra.mxu0 %v117_v63  ;;  %v434_v61 = vld [vmem:[#allocation7 + $0x178] sm:$0xff]  ;;  %v432_v63 = vld [vmem:[#allocation7 + $0x168] sm:$0xff] }
  0x71   :  { %373 = vmatpush2.msra.mxu1 %v181_v0  ;;  %303 = vmatprep.subr.mxu0 %v116_v2  ;;  %v431_v0 = vld [vmem:[#allocation7 + $0x160] sm:$0xff]  ;;  %v429_v2 = vld [vmem:[#allocation7 + $0x150] sm:$0xff] }
  0x72   :  { %374 = vmatprep.subr.mxu1 %v180_v3  ;;  %304 = vmatpush2.msra.mxu0 %v115_v4  ;;  %v428_v3 = vld [vmem:[#allocation7 + $0x148] sm:$0xff]  ;;  %v427_v4 = vld [vmem:[#allocation7 + $0x140] sm:$0xff] }
  0x73   :  { %375 = vmatpush2.msra.mxu1 %v179_v5  ;;  %305 = vmatprep.subr.mxu0 %v114_v6  ;;  %v426_v5 = vld [vmem:[#allocation7 + $0x138] sm:$0xff]  ;;  %v425_v6 = vld [vmem:[#allocation7 + $0x130] sm:$0xff] }
  0x74   :  { %376 = vmatprep.subr.mxu1 %v178_v7  ;;  %306 = vmatpush2.msra.mxu0 %v113_v9  ;;  %v424_v7 = vld [vmem:[#allocation7 + $0x128] sm:$0xff]  ;;  %v422_v9 = vld [vmem:[#allocation7 + $0x118] sm:$0xff] }
  0x75   :  { %307 = vmatprep.mubr.f32.mxu0 %v237_v8  ;;  %377 = vmatpush2.msra.mxu1 %v177_v11  ;;  %v423_v8 = vld [vmem:[#allocation7 + $0x120] sm:$0xff]  ;;  %v420_v11 = vld [vmem:[#allocation7 + $0x108] sm:$0xff] }
  0x76   :  { %378 = vmatprep.mubr.f32.mxu1 %v238_v10  ;;  %308 = vmatmul.mubr.f32.vlgmr.msra.gmra.mxu0 %v229_v62  ;;  %v433_v62 = vld [vmem:[#allocation7 + $0x170] sm:$0xff] }
  0x77   :  { %379 = vmatmul.mubr.f32.vlgmr.msra.gmra.mxu1 %v236_v1  ;;  %463 = vmatprep.subr.mxu0 %v418_v12  ;;  %v430_v1 = vld [vmem:[#allocation7 + $0x158] sm:$0xff]  ;;  %v421_v10 = vld [vmem:[#allocation7 + $0x110] sm:$0xff]  ;;  %v419_v12 = vld [vmem:[#allocation7 + $0x100] sm:$0xff] }
  0x78   :  { %464 = vmatpush1.msra.mxu0 %v417_v13  ;;  %v567_v13 = vld [vmem:[#allocation8 + $0xf8] sm:$0xff] }
  0x79   :  { %465 = vmatprep.subr.mxu0 %v416_v14  ;;  %v551_v14 = vld [vmem:[#allocation8 + $0x78] sm:$0xff]  ;;  %664 = vmatprep.subr.mxu1 %v567_v13 }
  0x7a   :  { %466 = vmatpush1.msra.mxu0 %v415_v15  ;;  %v566_v15 = vld [vmem:[#allocation8 + $0xf0] sm:$0xff]  ;;  %665 = vmatpush3.msra.mxu1 %v551_v14 }
  0x7b   :  { %467 = vmatprep.subr.mxu0 %v414_v16  ;;  %v550_v16 = vld [vmem:[#allocation8 + $0x70] sm:$0xff]  ;;  %666 = vmatprep.subr.mxu1 %v566_v15 }
  0x7c   :  { %468 = vmatpush1.msra.mxu0 %v413_v17  ;;  %v565_v17 = vld [vmem:[#allocation8 + $0xe8] sm:$0xff]  ;;  %667 = vmatpush3.msra.mxu1 %v550_v16 }
  0x7d   :  { %469 = vmatprep.subr.mxu0 %v412_v18  ;;  %v549_v18 = vld [vmem:[#allocation8 + $0x68] sm:$0xff]  ;;  %668 = vmatprep.subr.mxu1 %v565_v17 }
  0x7e   :  { %470 = vmatpush1.msra.mxu0 %v411_v19  ;;  %v564_v19 = vld [vmem:[#allocation8 + $0xe0] sm:$0xff]  ;;  %669 = vmatpush3.msra.mxu1 %v549_v18 }
  0x7f   :  { %471 = vmatprep.subr.mxu0 %v410_v20  ;;  %v548_v20 = vld [vmem:[#allocation8 + $0x60] sm:$0xff]  ;;  %670 = vmatprep.subr.mxu1 %v564_v19 }
  0x80   :  { %472 = vmatpush1.msra.mxu0 %v409_v21  ;;  %v563_v21 = vld [vmem:[#allocation8 + $0xd8] sm:$0xff]  ;;  %671 = vmatpush3.msra.mxu1 %v548_v20 }
  0x81   :  { %473 = vmatprep.subr.mxu0 %v408_v22  ;;  %v547_v22 = vld [vmem:[#allocation8 + $0x58] sm:$0xff]  ;;  %672 = vmatprep.subr.mxu1 %v563_v21 }
  0x82   :  { %474 = vmatpush1.msra.mxu0 %v407_v23  ;;  %v562_v23 = vld [vmem:[#allocation8 + $0xd0] sm:$0xff]  ;;  %673 = vmatpush3.msra.mxu1 %v547_v22 }
  0x83   :  { %475 = vmatprep.subr.mxu0 %v406_v24  ;;  %v546_v24 = vld [vmem:[#allocation8 + $0x50] sm:$0xff]  ;;  %674 = vmatprep.subr.mxu1 %v562_v23 }
  0x84   :  { %476 = vmatpush1.msra.mxu0 %v405_v25  ;;  %v561_v25 = vld [vmem:[#allocation8 + $0xc8] sm:$0xff]  ;;  %675 = vmatpush3.msra.mxu1 %v546_v24 }
  0x85   :  { %477 = vmatprep.subr.mxu0 %v404_v26  ;;  %v545_v26 = vld [vmem:[#allocation8 + $0x48] sm:$0xff]  ;;  %676 = vmatprep.subr.mxu1 %v561_v25 }
  0x86   :  { %478 = vmatpush1.msra.mxu0 %v403_v27  ;;  %v560_v27 = vld [vmem:[#allocation8 + $0xc0] sm:$0xff]  ;;  %677 = vmatpush3.msra.mxu1 %v545_v26 }
  0x87   :  { %479 = vmatprep.subr.mxu0 %v402_v28  ;;  %v544_v28 = vld [vmem:[#allocation8 + $0x40] sm:$0xff]  ;;  %678 = vmatprep.subr.mxu1 %v560_v27 }
  0x88   :  { %480 = vmatpush1.msra.mxu0 %v401_v29  ;;  %v559_v29 = vld [vmem:[#allocation8 + $0xb8] sm:$0xff]  ;;  %679 = vmatpush3.msra.mxu1 %v544_v28 }
  0x89   :  { %481 = vmatprep.subr.mxu0 %v400_v30  ;;  %v543_v30 = vld [vmem:[#allocation8 + $0x38] sm:$0xff]  ;;  %680 = vmatprep.subr.mxu1 %v559_v29 }
  0x8a   :  { %482 = vmatpush1.msra.mxu0 %v399_v31  ;;  %v558_v31 = vld [vmem:[#allocation8 + $0xb0] sm:$0xff]  ;;  %681 = vmatpush3.msra.mxu1 %v543_v30 }
  0x8b   :  { %483 = vmatprep.subr.mxu0 %v398_v32  ;;  %v542_v32 = vld [vmem:[#allocation8 + $0x30] sm:$0xff]  ;;  %682 = vmatprep.subr.mxu1 %v558_v31 }
  0x8c   :  { %484 = vmatpush1.msra.mxu0 %v397_v33  ;;  %v557_v33 = vld [vmem:[#allocation8 + $0xa8] sm:$0xff]  ;;  %683 = vmatpush3.msra.mxu1 %v542_v32 }
  0x8d   :  { %485 = vmatprep.subr.mxu0 %v396_v34  ;;  %v541_v34 = vld [vmem:[#allocation8 + $0x28] sm:$0xff]  ;;  %684 = vmatprep.subr.mxu1 %v557_v33 }
  0x8e   :  { %486 = vmatpush1.msra.mxu0 %v395_v35  ;;  %v556_v35 = vld [vmem:[#allocation8 + $0xa0] sm:$0xff]  ;;  %685 = vmatpush3.msra.mxu1 %v541_v34 }
  0x8f   :  { %487 = vmatprep.subr.mxu0 %v394_v36  ;;  %v540_v36 = vld [vmem:[#allocation8 + $0x20] sm:$0xff]  ;;  %686 = vmatprep.subr.mxu1 %v556_v35 }
  0x90   :  { %488 = vmatpush1.msra.mxu0 %v393_v37  ;;  %687 = vmatpush3.msra.mxu1 %v540_v36  ;;  %v213_v37 = vsub.s32 0, %v880_v41 }
  0x91   :  { %489 = vmatprep.subr.mxu0 %v392_v38  ;;  %v209_v38 = vld [vmem:[%s899_s2] sm:$0x3] }
  0x92   :  { %490 = vmatpush1.msra.mxu0 %v391_v39  ;;  %v217_v39 = vsub.s32 1, %v880_v41  ;;  %v538_v41 = vld [vmem:[#allocation8 + $0x10] sm:$0xff] }
  0x93   :  { %491 = vmatprep.subr.mxu0 %v390_v40  ;;  %v214_v40 = vrot.slane %v209_v38, %v213_v37 }
  0x94   :  { %492 = vmatpush1.msra.mxu0 %v389_v42  ;;  %v218_v42 = vrot.slane %v209_v38, %v217_v39 }
  0x95   :  { %493 = vmatprep.subr.mxu0 %v388_v43 }
  0x96   :  { %494 = vmatpush1.msra.mxu0 %v387_v44 }
  0x97   :  { %495 = vmatprep.subr.mxu0 %v450_v45 }
  0x98   :  { %496 = vmatpush2.msra.mxu0 %v449_v46 }
  0x99   :  { %497 = vmatprep.subr.mxu0 %v448_v47 }
  0x9a   :  { %498 = vmatpush2.msra.mxu0 %v447_v48 }
  0x9b   :  { %499 = vmatprep.subr.mxu0 %v446_v49 }
  0x9c   :  { %500 = vmatpush2.msra.mxu0 %v445_v50 }
  0x9d   :  { %501 = vmatprep.subr.mxu0 %v444_v51 }
  0x9e   :  { %502 = vmatpush2.msra.mxu0 %v443_v52 }
  0x9f   :  { %503 = vmatprep.subr.mxu0 %v442_v53  ;;  %v555_v53 = vld [vmem:[#allocation8 + $0x98] sm:$0xff] }
  0xa0   :  { %504 = vmatpush2.msra.mxu0 %v441_v54  ;;  %688 = vmatprep.subr.mxu1 %v555_v53  ;;  %v539_v54 = vld [vmem:[#allocation8 + $0x18] sm:$0xff] }
  0xa1   :  { %505 = vmatprep.subr.mxu0 %v440_v55  ;;  %689 = vmatpush3.msra.mxu1 %v539_v54  ;;  %v554_v55 = vld [vmem:[#allocation8 + $0x90] sm:$0xff] }
  0xa2   :  { %506 = vmatpush2.msra.mxu0 %v439_v56  ;;  %690 = vmatprep.subr.mxu1 %v554_v55  ;;  %v553_v56 = vld [vmem:[#allocation8 + $0x88] sm:$0xff] }
  0xa3   :  { %507 = vmatprep.subr.mxu0 %v438_v57  ;;  %691 = vmatpush3.msra.mxu1 %v538_v41  ;;  %v537_v57 = vld [vmem:[#allocation8 + $0x8] sm:$0xff] }
  0xa4   :  { %508 = vmatpush2.msra.mxu0 %v437_v58  ;;  %692 = vmatprep.subr.mxu1 %v553_v56  ;;  %v552_v58 = vld [vmem:[#allocation8 + $0x80] sm:$0xff] }
  0xa5   :  { %509 = vmatprep.subr.mxu0 %v436_v59  ;;  %693 = vmatpush3.msra.mxu1 %v537_v57  ;;  %v536_v59 = vld [vmem:[#allocation8] sm:$0xff] }
  0xa6   :  { %510 = vmatpush2.msra.mxu0 %v435_v60  ;;  %694 = vmatprep.subr.mxu1 %v552_v58  ;;  %v451_v60 = vld [vmem:[%s901_s4] sm:$0x3]  ;;  %s790_s4 = scalar_lea.vmem %s653_s27, 32 }
  0xa7   :  { %511 = vmatprep.subr.mxu0 %v434_v61  ;;  %695 = vmatpush3.msra.mxu1 %v536_v59  ;;  %v456_v61 = vrot.slane %v451_v60, %v213_v37  ;;  %p791_p6 = scmp.ne.s32.totalorder %s653_s27, %s790_s4  ;;  %p796_p8 = scmp.lt.s32.totalorder %s790_s4, %s790_s4 }
  0xa8   :  { %512 = vmatpush2.msra.mxu0 %v433_v62  ;;  %v460_v62 = vrot.slane %v451_v60, %v217_v39 }
  0xa9   :  { %513 = vmatprep.subr.mxu0 %v432_v63  ;;  %p797_p9 = por %p796_p8, %p795_p7 }
  0xaa   :  { %514 = vmatpush2.msra.mxu0 %v431_v0 }
  0xab   :  { %515 = vmatprep.subr.mxu0 %v430_v1  ;;  %p798_p10 = pnand %p797_p9, %p791_p6 }
  0xac   :  { %516 = vmatpush2.msra.mxu0 %v429_v2 }
  0xad   :  { %517 = vmatprep.subr.mxu0 %v428_v3 }
  0xae   :  { %518 = vmatpush2.msra.mxu0 %v427_v4 }
  0xaf   :  { %519 = vmatprep.subr.mxu0 %v426_v5 }
  0xb0   :  { %520 = vmatpush2.msra.mxu0 %v425_v6  ;;  %v663_v6 = vld [vmem:[%s903_s6] ss:$0 sm:$0xff] }
  0xb1   :  { %521 = vmatprep.subr.mxu0 %v424_v7 }
  0xb2   :  { %522 = vmatpush2.msra.mxu0 %v423_v8 }
  0xb3   :  { %523 = vmatprep.subr.mxu0 %v422_v9 }
  0xb4   :  { %524 = vmatpush2.msra.mxu0 %v421_v10 }
  0xb5   :  { %525 = vmatprep.subr.mxu0 %v420_v11 }
  0xb6   :  { %526 = vmatpush2.msra.mxu0 %v419_v12 }
 0x136   :  { %v309_v43 = vpop.f32.mrf.mxu0 }
 0x137   :  { %v380_v44 = vpop.f32.mrf.mxu1  ;;  %v310_v45 = vadd.f32 %v309_v43, %v214_v40 }
 0x138   :  { %v311_v46 = vpop.f32.mrf.mxu0 }
 0x139   :  { %v312_v47 = vadd.f32 %v311_v46, %v218_v42  ;;  %v381_v48 = vadd.f32 %v380_v44, %v310_v45  ;;  %v382_v49 = vpop.f32.mrf.mxu1 }
 0x13b   :  { %v383_v50 = vadd.f32 %v382_v49, %v312_v47  ;;  %v385_v52 = vmax.f32 %v381_v48, 0.0 }
 0x13d   :  { %v386_v51 = vmax.f32 %v383_v50, 0.0 }
 0x13f   :  { %527 = vmatprep.mubr.f32.mxu0 %v386_v51 }
 0x140   :  { %528 = vmatmul.mubr.f32.vlgmr.msra.gmra.mxu0 %v385_v52 }
 0x200   :  { %v529_v63 = vpop.f32.mrf.mxu0 }
 0x201   :  { %v530_v0 = vadd.f32 %v529_v63, %v456_v61 }
 0x202   :  { %v531_v1 = vpop.f32.mrf.mxu0 }
 0x203   :  { %v532_v2 = vadd.f32 %v531_v1, %v460_v62  ;;  %v534_v4 = vmax.f32 %v530_v0, 0.0 }
 0x205   :  { %v535_v3 = vmax.f32 %v532_v2, 0.0 }
 0x207   :  { %639 = vmatprep.mubr.f32.mxu1 %v535_v3 }
 0x208   :  { %640 = vmatmul.mubr.f32.vlgmr.msra.gmra.mxu1 %v534_v4 }
 0x2c8   :  { %v696_v5 = vpop.f32.mrf.mxu1 }
 0x2ca   :  { %v697_v7 = vpop.f32.mrf.mxu1 }
 0x2cb   :  { %v698_v8 = vadd.f32 %v697_v7, %v696_v5 }
 0x2cd   :  { %v642_v9 = vadd.f32 %v698_v8, %v663_v6 }
 0x2cf   :  { %645 = vst [vmem:[#allocation10] sm:$0x3] %v642_v9 }
 0x2d0   :  { %801 = shalt.err (!%p798_p10)
}
 0x2d1   :  { %655 = dma.vmem_to_hbm [thread:$0]  %s653_s27, 32, %s904_s7, [#allocation4]  }
 0x2d2   :  { %816 = dma.done.wait [#allocation4], 32  }
 0x2d3   :  { %817 = vsyncadd [#allocation4], 4294967264 }
 0x2d4   :  { %659 = vsyncpa [#allocation3], 1 }
 0x2d5   :  { %660 = vsyncpa [#allocation6], 1 }
 0x2d6   :  { %661 = vsyncpa [#allocation9], 1 }
 0x2d7   :  { %662 = vsyncpa [#allocation4], 1 }

</bundles_post_ra>
